<compile_context>
chip_gen: v6e
topology: v6e:2x2x1
jax: 0.10.0
libtpu: 0.0.40
codegen_flags: <defaults>
</compile_context>

<pallas_src>
import functools

import jax
import jax.numpy as jnp
from jax.experimental import pallas as pl
from jax.experimental.pallas import tpu as pltpu


# ----------------------------------------------------------------------------
# Pallas kernel: 1x1-conv channel mix, optionally fused with residual + PReLU
# ----------------------------------------------------------------------------
def _make_kernel(fuse, precision):
    if fuse:
        def kernel(x_ref, w_ref, b_ref, r_ref, a_ref, o_ref):
            # x_ref: (1, rows_in, tm)   activations (nb batches packed in sublanes)
            # w_ref: (rows_out, rows_in) block-diagonal weight (resident)
            # b_ref: (rows_out, 1)       bias (resident)
            # r_ref: (1, rows_out, tm)   residual block
            # a_ref: (1,) SMEM           PReLU slope
            # o_ref: (1, rows_out, tm)   lane-dense output
            acc = jax.lax.dot_general(
                w_ref[...], x_ref[0],
                dimension_numbers=(((1,), (0,)), ((), ())),
                preferred_element_type=jnp.float32,
                precision=precision)
            acc = acc + b_ref[...].astype(jnp.float32)
            acc = acc + r_ref[0].astype(jnp.float32)
            a = a_ref[0]
            acc = jnp.where(acc >= 0.0, acc, a * acc)     # PReLU epilogue (VPU filler)
            o_ref[0] = acc.astype(o_ref.dtype)
    else:
        def kernel(x_ref, w_ref, b_ref, o_ref):
            acc = jax.lax.dot_general(
                w_ref[...], x_ref[0],
                dimension_numbers=(((1,), (0,)), ((), ())),
                preferred_element_type=jnp.float32,
                precision=precision)
            acc = acc + b_ref[...].astype(jnp.float32)
            o_ref[0] = acc.astype(o_ref.dtype)
    return kernel


def _vmem_caps():
    """Generation-aware VMEM block budget and scoped limit."""
    try:
        cap = int(pltpu.get_tpu_info().vmem_capacity_bytes)
    except Exception:
        cap = 64 * 1024 * 1024                       # conservative (v7x-sized)
    budget = min(cap // 2 - 8 * 1024 * 1024, 40 * 1024 * 1024)
    limit = min(cap // 2, 48 * 1024 * 1024)
    return max(budget, 8 * 1024 * 1024), max(limit, 16 * 1024 * 1024)


def _choose_nb(n, c_in, c_out):
    """Smallest divisor of n so the packed output fills >=8 f32 sublanes."""
    best = 1
    for nb in range(1, n + 1):
        if n % nb:
            continue
        if nb * c_in > 512:                          # keep the contraction dim modest
            break
        best = nb
        if nb * c_out >= 8:
            break
    return best


def _choose_tm(m, rows_in, rows_out, itemsize, budget, split_for_cores):
    """Largest lane tile (multiple of 128, <=8192) fitting the VMEM budget.
    Splits into >=2 tiles when the other parallel axis has only one block
    (keeps both v7x TensorCores busy)."""
    per_lane = 2 * (rows_in + 2 * rows_out) * itemsize      # double-buffered blocks
    resident = (rows_in * rows_out + rows_out) * 4

    def fits(tm):
        return per_lane * tm + resident <= budget

    if m <= 128:
        return m                                            # single full-extent block
    if m <= 8192 and fits(m):
        if split_for_cores and m >= 256:
            return (((m + 1) // 2) + 127) // 128 * 128       # two lane tiles
        return m
    tm = min(8192, (m // 128) * 128)
    while tm > 128 and not fits(tm):
        tm -= 128
    return tm


def conv1x1_nchw_pallas(x, weight, bias, *, res=None, prelu_a=None):
    """y = Conv2d(c_in, c_out, 1x1, bias) on NCHW input; if `res` is given the
    residual add + PReLU are fused into the kernel epilogue."""
    n, c_in, hh, ww = x.shape
    c_out = weight.shape[0]
    m = hh * ww
    fuse = res is not None

    nb = _choose_nb(n, c_in, c_out)
    g = n // nb
    rows_in, rows_out = nb * c_in, nb * c_out

    # NCHW-contiguous -> these reshapes are free views (no HBM transpose).
    x3 = x.reshape(g, rows_in, m)
    res3 = res.reshape(g, rows_out, m) if fuse else None

    if x.dtype == jnp.bfloat16:
        w_c = weight.astype(jnp.bfloat16)                    # native MXU input
        precision = None
    else:
        w_c = weight.astype(jnp.float32)
        precision = jax.lax.Precision.HIGHEST
    if nb > 1:
        w_bd = jnp.kron(jnp.eye(nb, dtype=w_c.dtype), w_c)   # block-diag over packed batches
        b_bd = jnp.tile(bias.astype(jnp.float32), nb).reshape(rows_out, 1)
    else:
        w_bd = w_c
        b_bd = bias.astype(jnp.float32).reshape(rows_out, 1)

    itemsize = x.dtype.itemsize
    budget, vmem_limit = _vmem_caps()
    tm = _choose_tm(m, rows_in, rows_out, itemsize, budget, split_for_cores=(g == 1))
    grid = (g, pl.cdiv(m, tm))                               # ragged edge masked by Pallas

    x_spec = pl.BlockSpec((1, rows_in, tm), lambda i, j: (i, 0, j))
    o_spec = pl.BlockSpec((1, rows_out, tm), lambda i, j: (i, 0, j))
    w_spec = pl.BlockSpec((rows_out, rows_in), lambda i, j: (0, 0))
    b_spec = pl.BlockSpec((rows_out, 1), lambda i, j: (0, 0))

    in_specs = [x_spec, w_spec, b_spec]
    args = [x3, w_bd, b_bd]
    if fuse:
        in_specs += [o_spec, pl.BlockSpec(memory_space=pltpu.MemorySpace.SMEM)]
        args += [res3, jnp.asarray(prelu_a, dtype=jnp.float32).reshape(1)]

    bytes_accessed = (x3.size + (res3.size if fuse else 0) + g * rows_out * m) * itemsize \
                     + (w_bd.size + b_bd.size) * 4

    out = pl.pallas_call(
        _make_kernel(fuse=fuse, precision=precision),
        out_shape=jax.ShapeDtypeStruct((g, rows_out, m), x.dtype),
        grid_spec=pltpu.PrefetchScalarGridSpec(
            num_scalar_prefetch=0,
            grid=grid,
            in_specs=in_specs,
            out_specs=o_spec,
        ),
        compiler_params=pltpu.CompilerParams(
            dimension_semantics=("parallel", "parallel"),
            vmem_limit_bytes=int(vmem_limit),
        ),
        cost_estimate=pl.CostEstimate(
            flops=2 * n * m * c_in * c_out + (3 * n * m * c_out if fuse else n * m * c_out),
            transcendentals=0,
            bytes_accessed=int(bytes_accessed),
        ),
    )(*args)
    return out.reshape(n, c_out, hh, ww)


def conv1x1_nchw_xla(x, weight, bias, *, res=None, prelu_a=None):
    """Pure-JAX reference / small-shape fallback (XLA fuses the epilogue itself)."""
    y = jnp.einsum("ncvt,oc->novt", x, weight, precision=jax.lax.Precision.HIGHEST)
    y = y + bias[None, :, None, None]
    if res is not None:
        y = y + res
        y = jnp.where(y >= 0, y, prelu_a * y)
    return y.astype(x.dtype)


def conv1x1_nchw(x, weight, bias, *, res=None, prelu_a=None, impl="auto"):
    if impl == "auto":
        n, c_in, hh, ww = x.shape
        c_out = weight.shape[0]
        work_bytes = n * hh * ww * (c_in + (2 if res is not None else 1) * c_out) * x.dtype.itemsize
        # Below a few MiB the pallas_call launch/pipeline overhead dominates.
        impl = "pallas" if work_bytes >= (4 << 20) else "xla"
    if impl == "pallas":
        return conv1x1_nchw_pallas(x, weight, bias, res=res, prelu_a=prelu_a)
    return conv1x1_nchw_xla(x, weight, bias, res=res, prelu_a=prelu_a)


# ----------------------------------------------------------------------------
# Rest of STMH_GCNN_layer in plain JAX (tiny operands, single-vreg scale)
# ----------------------------------------------------------------------------
def _learn_embedding(t, factor, d_model):
    # learnEmbedding.forward, 2-D (B, T) branch.
    div = jnp.arange(0, d_model, 2, dtype=jnp.float32)
    div_term = jnp.exp(div * factor)                         # factor has shape (1,)
    phase = jnp.einsum("bt,f->btf", t, div_term)
    return jnp.concatenate([jnp.sin(phase), jnp.cos(phase)], axis=-1)


def _att_head(k_emb, q_emb, wq, wk, d):
    # ATT.forward(x=k_emb, y=q_emb): query = qm(y), key = km(x); Linear bias=False.
    query = jnp.einsum("btf,df->btd", q_emb, wq)
    key = jnp.einsum("btf,df->btd", k_emb, wk)
    attn = jnp.einsum("btf,bpf->btp", query, key) / (d ** 0.5)
    return jax.nn.softmax(attn, axis=-1)


def _nconv(x, a):
    return jnp.einsum("ncvl,vw->ncwl", x, a)


def _gcn(x, supports, order):
    out = [x]
    for a in supports:
        x1 = _nconv(x, a)
        out.append(x1)
        for _ in range(2, order + 1):
            x2 = _nconv(x1, a)
            out.append(x2)
            x1 = x2
    return jnp.concatenate(out, axis=1)


def stmh_gcnn_forward(x, t_in, supports, params, *, heads, order, time_d,
                      emb_size, final_layer=False, conv_impl="auto"):
    conv = functools.partial(conv1x1_nchw, impl=conv_impl)

    # --- multi-head temporal attention (plain JAX; T=16, d=16 fits one vreg) ---
    t_att = []
    for i in range(heads):
        k_emb = _learn_embedding(t_in, params["factor"][i], emb_size)
        q_emb = k_emb                                        # t_out is None in this call
        t_att.append(_att_head(k_emb, q_emb, params["wq"][i], params["wk"][i], time_d))

    # --- residual branch ---
    if "w_res" in params:
        # in_channels != out_channels: 1x1 conv + BatchNorm2d.  Eval-mode BN with
        # default running stats (mean=0, var=1, identity affine) folds into the
        # conv weights as a 1/sqrt(1+eps) scale.
        # TODO(synk): train-mode BatchNorm batch statistics are not implemented.
        bn_scale = 1.0 / (1.0 + 1e-5) ** 0.5
        res = conv(x, params["w_res"] * bn_scale, params["b_res"] * bn_scale)
    else:
        res = x                                              # nn.Identity()

    # --- temporal mixing: xt = sum_i einsum('ncvt,npt->ncvp', x, t_att[i]) ---
    xt = jnp.einsum("ncvt,npt->ncvp", x, t_att[0])
    for i in range(1, heads):
        xt = xt + jnp.einsum("ncvt,npt->ncvp", x, t_att[i])

    # --- graph convolution + output 1x1 conv ---
    h = _gcn(xt, supports, order)                            # (N, (order*support_len+1)*C, V, T)
    if final_layer:
        y = conv(h, params["w_out"], params["b_out"])
    else:
        # residual add + PReLU fused into the Pallas kernel epilogue
        y = conv(h, params["w_out"], params["b_out"], res=res, prelu_a=params["prelu_a"])

    # F.dropout with training=False (inference) is the identity.
    return y


if __name__ == "__main__":
    # Small shapes consistent with the module's forward:
    #   x: (N, C, V, T), t_in: (N, T), supports: 3 x (V, V)
    N, C_IN, C_OUT, V, T = 2, 4, 4, 16, 16
    EMB, TIME_D, HEADS, SUPPORT_LEN, ORDER = 32, 16, 4, 3, 2
    GC_IN = (ORDER * SUPPORT_LEN + 1) * C_IN                 # 28 channels into the output conv

    key = jax.random.PRNGKey(0)
    ks = jax.random.split(key, 10)

    x = jax.random.normal(ks[0], (N, C_IN, V, T), dtype=jnp.float32)
    t_in = jnp.broadcast_to(jnp.arange(T, dtype=jnp.float32) / T, (N, T))

    supports = []
    for i in range(SUPPORT_LEN):
        a = jax.random.uniform(ks[1 + i], (V, V), dtype=jnp.float32)
        supports.append(a / a.sum(axis=1, keepdims=True))    # random-walk matrices

    kq = 1.0 / (EMB ** 0.5)       # nn.Linear default U(-k, k), k = 1/sqrt(fan_in)
    ko = 1.0 / (GC_IN ** 0.5)     # Conv2d 1x1 default, fan_in = GC_IN
    params = {
        # small factor keeps exp(div * factor) in a well-conditioned range
        "factor": 0.1 * jax.random.normal(ks[4], (HEADS, 1), dtype=jnp.float32),
        "wq": jax.random.uniform(ks[5], (HEADS, TIME_D, EMB),
                                 minval=-kq, maxval=kq, dtype=jnp.float32),
        "wk": jax.random.uniform(ks[6], (HEADS, TIME_D, EMB),
                                 minval=-kq, maxval=kq, dtype=jnp.float32),
        "w_out": jax.random.uniform(ks[7], (C_OUT, GC_IN),
                                    minval=-ko, maxval=ko, dtype=jnp.float32),
        "b_out": jax.random.uniform(ks[8], (C_OUT,),
                                    minval=-ko, maxval=ko, dtype=jnp.float32),
        "prelu_a": jnp.asarray(0.25, dtype=jnp.float32),
    }
    # in_channels == out_channels -> residual is Identity (no w_res/b_res).

    fwd = functools.partial(stmh_gcnn_forward, heads=HEADS, order=ORDER,
                            time_d=TIME_D, emb_size=EMB)
    run_kernel = jax.jit(functools.partial(fwd, conv_impl="pallas"))   # force Pallas path
    run_ref = jax.jit(functools.partial(fwd, conv_impl="xla"))

    y = jax.block_until_ready(run_kernel(x, t_in, supports, params))
    y_ref = jax.block_until_ready(run_ref(x, t_in, supports, params))

    assert y.shape == (N, C_OUT, V, T)
    max_err = float(jnp.max(jnp.abs(y - y_ref)))
    assert jnp.allclose(y, y_ref, atol=1e-3, rtol=1e-3), max_err

    print("KERNEL_OK")
</pallas_src>

<mosaic_0001>
module attributes {stable_mosaic.version = 11 : i64} {
  func.func @kernel(%arg0: i32, %arg1: i32, %arg2: memref<1x56x128xf32, #tpu.memory_space<vmem>>, %arg3: memref<8x56xf32, #tpu.memory_space<vmem>>, %arg4: memref<8x1xf32, #tpu.memory_space<vmem>>, %arg5: memref<1x8x128xf32, #tpu.memory_space<vmem>>, %arg6: memref<1xf32, #tpu.memory_space<smem>>, %arg7: memref<1x8x128xf32, #tpu.memory_space<vmem>>) attributes {dimension_semantics = [#tpu.dimension_semantics<parallel>, #tpu.dimension_semantics<parallel>], iteration_bounds = array<i64: 1, 2>, scalar_prefetch = 0 : i64, scratch_operands = 0 : i64, tpu.core_type = #tpu.core_type<tc>, window_params = [{transform_indices = @transform_0, window_bounds = array<i64: 1, 56, 128>}, {pipeline_mode = #tpu.pipeline_mode<synchronous>, transform_indices = @transform_1, window_bounds = array<i64: 8, 56>}, {pipeline_mode = #tpu.pipeline_mode<synchronous>, transform_indices = @transform_2, window_bounds = array<i64: 8, 1>}, {transform_indices = @transform_3, window_bounds = array<i64: 1, 8, 128>}, {transform_indices = @transform_4, window_bounds = array<i64: 1>}, {transform_indices = @transform_5, window_bounds = array<i64: 1, 8, 128>}]} {
    %c0 = arith.constant 0 : index
    %c0_0 = arith.constant 0 : index
    %0 = vector.load %arg3[%c0, %c0_0] : memref<8x56xf32, #tpu.memory_space<vmem>>, vector<8x56xf32>
    %c0_1 = arith.constant 0 : index
    %c0_2 = arith.constant 0 : index
    %c0_3 = arith.constant 0 : index
    %1 = vector.load %arg2[%c0_1, %c0_2, %c0_3] : memref<1x56x128xf32, #tpu.memory_space<vmem>>, vector<1x56x128xf32>
    %2 = vector.shape_cast %1 : vector<1x56x128xf32> to vector<56x128xf32>
    %cst = arith.constant dense<0.000000e+00> : vector<8x128xf32>
    %3 = tpu.matmul %0, %2, %cst {dimension_numbers = #tpu.dot_dimension_numbers<[1], [0], [0], [1], [0, 0, 1, 1], [], []>, precision = #tpu.contract_precision<fp32>} : vector<8x56xf32>, vector<56x128xf32>, vector<8x128xf32> -> vector<8x128xf32>
    %c0_4 = arith.constant 0 : index
    %c0_5 = arith.constant 0 : index
    %4 = vector.load %arg4[%c0_4, %c0_5] : memref<8x1xf32, #tpu.memory_space<vmem>>, vector<8x1xf32>
    %5 = vector.broadcast %4 : vector<8x1xf32> to vector<8x128xf32>
    %6 = arith.addf %3, %5 : vector<8x128xf32>
    %c0_6 = arith.constant 0 : index
    %c0_7 = arith.constant 0 : index
    %c0_8 = arith.constant 0 : index
    %7 = vector.load %arg5[%c0_6, %c0_7, %c0_8] : memref<1x8x128xf32, #tpu.memory_space<vmem>>, vector<1x8x128xf32>
    %8 = vector.shape_cast %7 : vector<1x8x128xf32> to vector<8x128xf32>
    %9 = arith.addf %6, %8 : vector<8x128xf32>
    %c0_9 = arith.constant 0 : index
    %10 = memref.load %arg6[%c0_9] : memref<1xf32, #tpu.memory_space<smem>>
    %cst_10 = arith.constant 0.000000e+00 : f32
    %11 = vector.broadcast %cst_10 : f32 to vector<8x128xf32>
    %12 = arith.cmpf oge, %9, %11 : vector<8x128xf32>
    %13 = vector.broadcast %10 : f32 to vector<8x128xf32>
    %14 = arith.mulf %13, %9 : vector<8x128xf32>
    %15 = arith.select %12, %9, %14 : vector<8x128xi1>, vector<8x128xf32>
    %c0_11 = arith.constant 0 : index
    %c0_12 = arith.constant 0 : index
    %c0_13 = arith.constant 0 : index
    %16 = vector.load %arg7[%c0_11, %c0_12, %c0_13] : memref<1x8x128xf32, #tpu.memory_space<vmem>>, vector<1x8x128xf32>
    %17 = vector.shape_cast %16 : vector<1x8x128xf32> to vector<8x128xf32>
    %18 = vector.shape_cast %15 : vector<8x128xf32> to vector<1x8x128xf32>
    tpu.vector_store %arg7[%c0_11, %c0_12, %c0_13], %18 {strides = array<i32>} : memref<1x8x128xf32, #tpu.memory_space<vmem>>, vector<1x8x128xf32>,
    return
  }
  func.func @transform_0(%arg0: i32, %arg1: i32) -> (i32, i32, i32) {
    %c0_i32 = arith.constant 0 : i32
    %c0_i32_0 = arith.constant 0 : i32
    return %arg0, %c0_i32, %arg1 : i32, i32, i32
  }
  func.func @transform_1(%arg0: i32, %arg1: i32) -> (i32, i32) {
    %c0_i32 = arith.constant 0 : i32
    %c0_i32_0 = arith.constant 0 : i32
    %c0_i32_1 = arith.constant 0 : i32
    return %c0_i32, %c0_i32_0 : i32, i32
  }
  func.func @transform_2(%arg0: i32, %arg1: i32) -> (i32, i32) {
    %c0_i32 = arith.constant 0 : i32
    %c0_i32_0 = arith.constant 0 : i32
    %c0_i32_1 = arith.constant 0 : i32
    return %c0_i32, %c0_i32_0 : i32, i32
  }
  func.func @transform_3(%arg0: i32, %arg1: i32) -> (i32, i32, i32) {
    %c0_i32 = arith.constant 0 : i32
    %c0_i32_0 = arith.constant 0 : i32
    return %arg0, %c0_i32, %arg1 : i32, i32, i32
  }
  func.func @transform_4(%arg0: i32, %arg1: i32) -> i32 {
    %c0_i32 = arith.constant 0 : i32
    %c0_i32_0 = arith.constant 0 : i32
    return %c0_i32 : i32
  }
  func.func @transform_5(%arg0: i32, %arg1: i32) -> (i32, i32, i32) {
    %c0_i32 = arith.constant 0 : i32
    %c0_i32_0 = arith.constant 0 : i32
    return %arg0, %c0_i32, %arg1 : i32, i32, i32
  }
}

</mosaic_0001>

<bundles_post_ra>
// kernel: tile.8
= control target key start
LH: loop header
LB: loop body
LE: loop exit
PB: predicated region body
PF: predicated region fallthrough
CT: control target
= control target key end

     0   :  { %s22_s0 = inlined_call_operand.vmem [shape: f32[4], index: 0, kind: input, shape index: {}]   ;;  %s23_s1 = inlined_call_operand.vmem [shape: f32[2,4], index: 1, kind: output, shape index: {}]  }
   0x1   :  { %v4_v0 = vld [vmem:[%s22_s0] ss:$0 sm:$0xff] }
   0x2   :  { %5 = vst [vmem:[%s23_s1] sm:$0x3] %v4_v0 }

// kernel: tile.0
= control target key start
LH: loop header
LB: loop body
LE: loop exit
PB: predicated region body
PF: predicated region fallthrough
CT: control target
= control target key end

     0   :  { %s35_s8 = smov 125   ;;  %vm8_vm0 = vcmask 7168   ;;  %s36_s11 = smov 126   ;;  %s62_s0 = inlined_call_operand.vmem [shape: f32[2,4], index: 0, kind: input, shape index: {}]   ;;  %s63_s1 = inlined_call_operand.vmem [shape: f32[8,1], index: 1, kind: output, shape index: {}]  }
   0x1   :  { %v5_v0 = vld [vmem:[%s62_s0] sm:$0x3]  ;;  %s34_s0 = smov 127  }
   0x2   :  { %6 = vst [vmem:[#allocation0] sm:$0x3] %v5_v0 }
   0x9   :  { %v10_v1 = vld [vmem:[#allocation0] sm:$0x3]  }
   0xa   :  { %v22_v2 = vld [vmem:[#allocation0] sm:$0x3]   ;;  %11 = vrot.lane.b32.xlu0 %v10_v1, %s34_s0 }
   0xb   :  { %23 = vrot.lane.b32.xlu1 %v22_v2, %s35_s8  ;;  %v7_v3 = vld [vmem:[#allocation0] sm:$0x3]  }
   0xc   :  { %v16_v4 = vld [vmem:[#allocation0] sm:$0x3]   ;;  %9 = vst.msk [vmem:[%s63_s1] ss:$4 sm:$0x3] %vm8_vm0, %v7_v3  }
   0xe   :  { %17 = vrot.lane.b32.xlu0 %v16_v4, %s36_s11 }
  0x7c   :  { %v12_v5 = vpop.permute.xlu0 %11  }
  0x7d   :  { %v24_v6 = vpop.permute.xlu1 %23   ;;  %28 = vst.msk [vmem:[%s63_s1 + $0x1] ss:$4 sm:$0x3] %vm8_vm0, %v12_v5  }
  0x7e   :  { %30 = vst.msk [vmem:[%s63_s1 + $0x3] ss:$4 sm:$0x3] %vm8_vm0, %v24_v6  }
  0x80   :  { %v18_v7 = vpop.permute.xlu0 %17  }
  0x81   :  { %29 = vst.msk [vmem:[%s63_s1 + $0x2] ss:$4 sm:$0x3] %vm8_vm0, %v18_v7  }

// kernel: stmh_gcnn_forward.1
= control target key start
LH: loop header
LB: loop body
LE: loop exit
PB: predicated region body
PF: predicated region fallthrough
CT: control target
= control target key end

     0   :  { %s1524_s0 = inlined_call_operand.vmem [shape: f32[1,56,256], index: 0, kind: input, shape index: {}]   ;;  %s1525_s1 = inlined_call_operand.vmem [shape: f32[8,56], index: 1, kind: input, shape index: {}]   ;;  %s1526_s2 = inlined_call_operand.vmem [shape: f32[8,1], index: 2, kind: input, shape index: {}]   ;;  %s1527_s3 = inlined_call_operand.vmem [shape: f32[1,8,256], index: 3, kind: input, shape index: {}]   ;;  %s1528_s4 = inlined_call_operand.<no memory space> [shape: f32[1], index: 4, kind: input, shape index: {}]   ;;  %s1529_s5 = inlined_call_operand.vmem [shape: f32[1,8,256], index: 5, kind: output, shape index: {}]  }
   0x1   :  { %10 = sst [smem:[#allocation2]] %s1528_s4 }
   0x2   :  { %s1275_s20 = smov 0   ;;  %s1277_s21 = smov 0  }
   0x3   :  { %s1279_s22 = smov 0   ;;  %s1281_s23 = smov 0  }
   0x4   :  { %s1283_s24 = smov 0  }
   0x5 LB: > { %s25_s4 = sadd.s32 1, %s1233_s23  ;;  %p44_p1 = scmp.ne.s32.totalorder %s1225_s21, %s1221_s20  ;;  %s1237_s24 = sphi %s1283_s24, %s16_s24   ;;  %s1233_s23 = sphi %s1281_s23, %s1533_s23   ;;  %s1229_s22 = sphi %s1279_s22, %s1532_s22   ;;  %s1225_s21 = sphi %s1277_s21, %s1531_s21   ;;  %s1221_s20 = sphi %s1275_s20, %s1530_s20  }
   0x6   : > { %p26_p0 = scmp.ge.s32.totalorder %s25_s4, 2  ;;  %p45_p2 = scmp.eq.s32.totalorder %s1237_s24, 0 }
   0x7   : > { %s37_s26 = sadd.s32 1, %s1225_s21  ;;  %p996_p5 = scmp.ge.s32.totalorder %s1237_s24, 2 }
   0x8   : > { %s1535_s4 = smov (%p26_p0, %s25_s4), 0  ;;  %p46_p3 = por %p45_p2, %p44_p1 }
   0x9   : > { %s33_s25 = ssub.s32 %s1233_s23, %s1535_s4  ;;  %198 = sbr.rel (%p996_p5) target bundleno = 22 (0x16), region = 28 }
   0xa   : > { %p35_p4 = scmp.eq.s32.totalorder %s33_s25, 0 }
   0xc   : > { %s1310_s27 = scalar_select %p35_p4, %s1225_s21, %s37_s26  }
   0xe   : > { %201 = sbr.rel (!%p46_p3) target bundleno = 22 (0x16), region = 32  ;;  %s203_s28 = sand.u32 (%p46_p3), 1, %s1225_s21  }
   0xf   : > { %s997_s29 = sshll.u32 (%p46_p3), %s1233_s23, 3  ;;  %s1153_s30 = smul.u32 (%p46_p3), 56, %s203_s28 }
  0x10   : > { %s209_s8 = scalar_lea.vmem (%p46_p3), %s1524_s0, %s997_s29 }
  0x11   : > { %v250_v0 = vld [vmem:[%s209_s8] sm:$0xff] (%p46_p3)  ;;  %v252_v1 = vld [vmem:[%s209_s8 + $0x10] sm:$0xff] (%p46_p3)  ;;  %s205_s9 = scalar_lea.vmem (%p46_p3), [#allocation3], %s1153_s30 }
  0x12   : > { %v254_v2 = vld [vmem:[%s209_s8 + $0x20] sm:$0xff] (%p46_p3)  ;;  %v256_v3 = vld [vmem:[%s209_s8 + $0x30] sm:$0xff] (%p46_p3)  ;;  %251 = vst [vmem:[%s205_s9] sm:$0xff] (%p46_p3), %v250_v0  ;;  %253 = vst [vmem:[%s205_s9 + $0x8] sm:$0xff] (%p46_p3), %v252_v1 }
  0x13   : > { %v258_v4 = vld [vmem:[%s209_s8 + $0x40] sm:$0xff]  ;;  %v260_v5 = vld [vmem:[%s209_s8 + $0x50] sm:$0xff]  ;;  %255 = vst [vmem:[%s205_s9 + $0x10] sm:$0xff] %v254_v2  ;;  %257 = vst [vmem:[%s205_s9 + $0x18] sm:$0xff] %v256_v3 }
  0x14   : > { %259 = vst [vmem:[%s205_s9 + $0x20] sm:$0xff] %v258_v4  ;;  %261 = vst [vmem:[%s205_s9 + $0x28] sm:$0xff] %v260_v5  ;;  %v262_v6 = vld [vmem:[%s209_s8 + $0x60] sm:$0xff] }
  0x15   : > { %263 = vst [vmem:[%s205_s9 + $0x30] sm:$0xff] %v262_v6 }
  0x16 PF: > { %p998_p6 = scmp.ge.s32.totalorder %s1237_s24, 1  ;;  %p279_p7 = scmp.lt.s32.totalorder %s1237_s24, 3 }
  0x18   : > { %p280_p8 = pnand %p998_p6, %p279_p7 }
  0x19   : > { %s286_s10 = sand.u32 (!%p280_p8), 1, %s1221_s20   ;;  %p326_p9 = scmp.lt.s32.totalorder (!%p280_p8), %s1229_s22, 1 }
  0x1a   : > { %283 = sbr.rel (%p280_p8) target bundleno = 288 (0x120), region = 74  ;;  %s884_s18 = sld [smem:[#allocation2]] (!%p280_p8) }
  0x1b   : > { %s1154_s13 = smul.u32 (!%p280_p8), 56, %s286_s10 }
  0x1d   : > { %s288_s16 = scalar_lea.vmem (!%p280_p8), [#allocation3], %s1154_s13 }
  0x1f   : > { %v340_v7 = vld [vmem:[%s1525_s1] sm:$0xff]  ;;  %vm354_vm0 = vcmask 457728   ;;  %v1239_v8 = vmov 0.0   ;;  %vm1240_vm1 = vmmov 0   ;;  %v1241_v12 = vmov 0   ;;  %v347_v13 = vld [vmem:[%s288_s16 + $0x30] sm:$0xff] }
  0x20   : > { %1051 = vmatprep.subr.mxu0 %v1239_v8  ;;  %1068 = vmatprep.subr.mxu1 %v1239_v8  ;;  %v356_v9 = vsel %vm354_vm0, %v340_v7, 0  ;;  %v348_v10 = vld [vmem:[%s1526_s2] sm:$0xff]  ;;  %v1338_v17 = vand.u32 4294901760, %v347_v13  ;;  %v344_v20 = vld [vmem:[%s288_s16 + $0x18] sm:$0xff]  ;;  %v343_v21 = vld [vmem:[%s288_s16 + $0x10] sm:$0xff]  ;;  %s1537_s22 = smov (!%p326_p9, %s1229_s22), 1 }
  0x21   : > { %1065 = vmatprep.mubr.msk.f32.mxu0 %vm1240_vm1, %v1239_v8  ;;  %v1331_v11 = vand.u32 4294901760, %v356_v9  ;;  %1082 = vmatprep.mubr.msk.f32.mxu1 %vm1240_vm1, %v1239_v8  ;;  %v346_v14 = vld [vmem:[%s288_s16 + $0x28] sm:$0xff]  ;;  %v345_v15 = vld [vmem:[%s288_s16 + $0x20] sm:$0xff]  ;;  %v1344_v23 = vand.u32 4294901760, %v344_v20  ;;  %v1346_v24 = vand.u32 4294901760, %v343_v21  ;;  %s999_s17 = sshll.u32 %s1537_s22, 3 }
  0x22   : > { %1198 = vset.pattern.permute.xlu0 %v1241_v12  ;;  %v1340_v18 = vand.u32 4294901760, %v346_v14  ;;  %v1342_v19 = vand.u32 4294901760, %v345_v15  ;;  %v342_v22 = vld [vmem:[%s288_s16 + $0x8] sm:$0xff]  ;;  %v341_v26 = vld [vmem:[%s288_s16] sm:$0xff]  ;;  %1052 = vmatpush3.msra.mxu0 %v1338_v17  ;;  %v1352_v27 = vsub.f32 %v347_v13, %v1338_v17  ;;  %s331_s25 = scalar_lea.vmem %s1527_s3, %s999_s17  ;;  %s339_s29 = scalar_lea.vmem %s1529_s5, %s999_s17 }
  0x23   : > { %v1336_v16 = vsub.f32 %v356_v9, %v1331_v11  ;;  %351 = vperm.xlu0 %1198, %v348_v10   ;;  %v1348_v25 = vand.u32 4294901760, %v342_v22  ;;  %v1357_v29 = vand.u32 4294901760, %v341_v26  ;;  %1053 = vmatprep.subr.mxu0 %v1239_v8  ;;  %v1365_v32 = vsub.f32 %v344_v20, %v1344_v23  ;;  %v882_v12 = vld [vmem:[%s331_s25] sm:$0xff] }
  0x24   : > { %v1355_v28 = vsub.f32 %v346_v14, %v1340_v18  ;;  %v1360_v30 = vsub.f32 %v345_v15, %v1342_v19  ;;  %v1368_v33 = vsub.f32 %v343_v21, %v1346_v24  ;;  %1054 = vmatpush3.msra.mxu0 %v1340_v18  ;;  %v461_v34 = vand.u32 4294901760, %v1352_v27 }
  0x25   : > { %v432_v31 = vand.u32 4294901760, %v1336_v16  ;;  %v1375_v37 = vsub.f32 %v342_v22, %v1348_v25  ;;  %1055 = vmatprep.subr.mxu0 %v1239_v8  ;;  %v482_v38 = vand.u32 4294901760, %v1365_v32  ;;  %v1380_v39 = vsub.f32 %v341_v26, %v1357_v29 }
  0x26   : > { %v468_v35 = vand.u32 4294901760, %v1355_v28  ;;  %v475_v36 = vand.u32 4294901760, %v1360_v30  ;;  %1056 = vmatpush3.msra.mxu0 %v1342_v19  ;;  %v462_v40 = vsub.f32 %v1352_v27, %v461_v34  ;;  %v489_v43 = vand.u32 4294901760, %v1368_v33 }
  0x27   : > { %1057 = vmatprep.subr.mxu0 %v1239_v8  ;;  %v433_v44 = vsub.f32 %v1336_v16, %v432_v31  ;;  %v483_v47 = vsub.f32 %v1365_v32, %v482_v38  ;;  %v496_v48 = vand.u32 4294901760, %v1375_v37  ;;  %v503_v51 = vand.u32 4294901760, %v1380_v39 }
  0x28   : > { %v469_v41 = vsub.f32 %v1355_v28, %v468_v35  ;;  %v476_v42 = vsub.f32 %v1360_v30, %v475_v36  ;;  %1058 = vmatpush3.msra.mxu0 %v1344_v23  ;;  %v463_v45 = vand.u32 4294901760, %v462_v40  ;;  %v490_v50 = vsub.f32 %v1368_v33, %v489_v43 }
  0x29   : > { %1059 = vmatprep.subr.mxu0 %v1239_v8  ;;  %v434_v52 = vand.u32 4294901760, %v433_v44  ;;  %v484_v53 = vand.u32 4294901760, %v483_v47  ;;  %v497_v54 = vsub.f32 %v1375_v37, %v496_v48  ;;  %v504_v56 = vsub.f32 %v1380_v39, %v503_v51 }
  0x2a   : > { %v470_v46 = vand.u32 4294901760, %v469_v41  ;;  %1060 = vmatpush3.msra.mxu0 %v1346_v24  ;;  %1069 = vmatpush3.msra.mxu1 %v463_v45  ;;  %v477_v49 = vand.u32 4294901760, %v476_v42  ;;  %v491_v55 = vand.u32 4294901760, %v490_v50  ;;  %v886_v14 = vstv %s884_s18 }
  0x2b   : > { %1061 = vmatprep.subr.mxu0 %v1239_v8  ;;  %1070 = vmatprep.subr.mxu1 %v1239_v8  ;;  %v498_v57 = vand.u32 4294901760, %v497_v54  ;;  %v505_v58 = vand.u32 4294901760, %v504_v56 }
  0x2c   : > { %1062 = vmatpush3.msra.mxu0 %v1348_v25  ;;  %1071 = vmatpush3.msra.mxu1 %v470_v46 }
  0x2d   : > { %1063 = vmatprep.subr.mxu0 %v1239_v8  ;;  %1072 = vmatprep.subr.mxu1 %v1239_v8 }
  0x2e   : > { %1064 = vmatpush3.msra.mxu0 %v1357_v29  ;;  %1073 = vmatpush3.msra.mxu1 %v477_v49 }
  0x2f   : > { %1074 = vmatprep.subr.mxu1 %v1239_v8  ;;  %1085 = vmatprep.subr.mxu0 %v1239_v8 }
  0x30   : > { %1066 = vmatmul.mubr.f32.vlgmr.msra.gmra.mxu0 %v434_v52  ;;  %1075 = vmatpush3.msra.mxu1 %v484_v53 }
  0x31   : > { %1086 = vmatpush3.msra.mxu0 %v1352_v27  ;;  %1076 = vmatprep.subr.mxu1 %v1239_v8 }
  0x32   : > { %1087 = vmatprep.subr.mxu0 %v1239_v8  ;;  %1077 = vmatpush3.msra.mxu1 %v491_v55 }
  0x33   : > { %1088 = vmatpush3.msra.mxu0 %v1355_v28  ;;  %1078 = vmatprep.subr.mxu1 %v1239_v8 }
  0x34   : > { %1089 = vmatprep.subr.mxu0 %v1239_v8  ;;  %1079 = vmatpush3.msra.mxu1 %v498_v57 }
  0x35   : > { %1090 = vmatpush3.msra.mxu0 %v1360_v30  ;;  %1080 = vmatprep.subr.mxu1 %v1239_v8 }
  0x36   : > { %1091 = vmatprep.subr.mxu0 %v1239_v8  ;;  %1081 = vmatpush3.msra.mxu1 %v505_v58 }
  0x37   : > { %1092 = vmatpush3.msra.mxu0 %v1365_v32  ;;  %1083 = vmatmul.mubr.f32.vlgmr.msra.gmra.mxu1 %v1331_v11 }
  0x38   : > { %1093 = vmatprep.subr.mxu0 %v1239_v8  ;;  %1102 = vmatprep.subr.mxu1 %v1239_v8 }
  0x39   : > { %1094 = vmatpush3.msra.mxu0 %v1368_v33  ;;  %1103 = vmatpush3.msra.mxu1 %v1338_v17 }
  0x3a   : > { %1095 = vmatprep.subr.mxu0 %v1239_v8  ;;  %1104 = vmatprep.subr.mxu1 %v1239_v8 }
  0x3b   : > { %1096 = vmatpush3.msra.mxu0 %v1375_v37  ;;  %1105 = vmatpush3.msra.mxu1 %v1340_v18 }
  0x3c   : > { %1097 = vmatprep.subr.mxu0 %v1239_v8  ;;  %1106 = vmatprep.subr.mxu1 %v1239_v8 }
  0x3d   : > { %1098 = vmatpush3.msra.mxu0 %v1380_v39  ;;  %1099 = vmatprep.mubr.msk.f32.mxu0 %vm1240_vm1, %v1239_v8 }
  0x3e   : > { %1107 = vmatpush3.msra.mxu1 %v1342_v19  ;;  %1100 = vmatmul.mubr.f32.vlgmr.msra.gmra.mxu0 %v1336_v16 }
  0x3f   : > { %1108 = vmatprep.subr.mxu1 %v1239_v8  ;;  %1119 = vmatprep.subr.mxu0 %v1239_v8 }
  0x40   : > { %1109 = vmatpush3.msra.mxu1 %v1344_v23  ;;  %1120 = vmatpush3.msra.mxu0 %v461_v34 }
  0x41   : > { %1110 = vmatprep.subr.mxu1 %v1239_v8  ;;  %1121 = vmatprep.subr.mxu0 %v1239_v8 }
  0x42   : > { %1111 = vmatpush3.msra.mxu1 %v1346_v24  ;;  %1122 = vmatpush3.msra.mxu0 %v468_v35 }
  0x43   : > { %1112 = vmatprep.subr.mxu1 %v1239_v8  ;;  %1123 = vmatprep.subr.mxu0 %v1239_v8 }
  0x44   : > { %1113 = vmatpush3.msra.mxu1 %v1348_v25  ;;  %1124 = vmatpush3.msra.mxu0 %v475_v36 }
  0x45   : > { %1114 = vmatprep.subr.mxu1 %v1239_v8  ;;  %1125 = vmatprep.subr.mxu0 %v1239_v8 }
  0x46   : > { %1115 = vmatpush3.msra.mxu1 %v1357_v29  ;;  %1116 = vmatprep.mubr.msk.f32.mxu1 %vm1240_vm1, %v1239_v8 }
  0x47   : > { %1126 = vmatpush3.msra.mxu0 %v482_v38  ;;  %1117 = vmatmul.mubr.f32.vlgmr.msra.gmra.mxu1 %v432_v31 }
  0x48   : > { %1127 = vmatprep.subr.mxu0 %v1239_v8  ;;  %1136 = vmatprep.subr.mxu1 %v1239_v8 }
  0x49   : > { %1128 = vmatpush3.msra.mxu0 %v489_v43  ;;  %1137 = vmatpush3.msra.mxu1 %v1338_v17 }
  0x4a   : > { %1129 = vmatprep.subr.mxu0 %v1239_v8  ;;  %1138 = vmatprep.subr.mxu1 %v1239_v8 }
  0x4b   : > { %1130 = vmatpush3.msra.mxu0 %v496_v48  ;;  %1139 = vmatpush3.msra.mxu1 %v1340_v18 }
  0x4c   : > { %1131 = vmatprep.subr.mxu0 %v1239_v8  ;;  %1140 = vmatprep.subr.mxu1 %v1239_v8 }
  0x4d   : > { %1132 = vmatpush3.msra.mxu0 %v503_v51  ;;  %1133 = vmatprep.mubr.msk.f32.mxu0 %vm1240_vm1, %v1239_v8 }
  0x4e   : > { %1141 = vmatpush3.msra.mxu1 %v1342_v19  ;;  %1134 = vmatmul.mubr.f32.vlgmr.msra.gmra.mxu0 %v1331_v11 }
  0x4f   : > { %1142 = vmatprep.subr.mxu1 %v1239_v8  ;;  %1150 = vmatprep.mubr.msk.f32.mxu1 %vm1240_vm1, %v1239_v8 }
  0x50   : > { %1143 = vmatpush3.msra.mxu1 %v1344_v23 }
  0x51   : > { %1144 = vmatprep.subr.mxu1 %v1239_v8 }
  0x52   : > { %1145 = vmatpush3.msra.mxu1 %v1346_v24 }
  0x53   : > { %1146 = vmatprep.subr.mxu1 %v1239_v8 }
  0x54   : > { %1147 = vmatpush3.msra.mxu1 %v1348_v25 }
  0x55   : > { %1148 = vmatprep.subr.mxu1 %v1239_v8 }
  0x56   : > { %1149 = vmatpush3.msra.mxu1 %v1357_v29 }
  0x57   : > { %1151 = vmatmul.mubr.f32.vlgmr.msra.gmra.mxu1 %v1331_v11 }
  0x9e   : > { %v352_v2 = vpop.permute.xlu0 %351 }
  0xf0   : > { %v436_v59 = vpop.f32.mrf.mxu0 }
  0xf1   : > { %v437_v4 = vadd.f32 %v436_v59, %v352_v2 }
  0xf2   : > { %v1067_v60 = vpop.f32.mrf.mxu0 }
  0xf7   : > { %v542_v61 = vpop.f32.mrf.mxu1 }
  0xf8   : > { %v543_v6 = vadd.f32 %v542_v61, %v437_v4 }
  0xf9   : > { %v1084_v62 = vpop.f32.mrf.mxu1 }
  0xfe   : > { %v628_v63 = vpop.f32.mrf.mxu0 }
  0xff   : > { %v629_v8 = vadd.f32 %v628_v63, %v543_v6 }
 0x100   : > { %v1101_v0 = vpop.f32.mrf.mxu0 }
 0x107   : > { %v708_v1 = vpop.f32.mrf.mxu1 }
 0x108   : > { %v709_v9 = vadd.f32 %v708_v1, %v629_v8 }
 0x109   : > { %v1118_v3 = vpop.f32.mrf.mxu1 }
 0x10e   : > { %v800_v5 = vpop.f32.mrf.mxu0 }
 0x10f   : > { %v801_v10 = vadd.f32 %v800_v5, %v709_v9 }
 0x110   : > { %v1135_v7 = vpop.f32.mrf.mxu0 }
 0x117   : > { %v878_v11 = vpop.f32.mrf.mxu1 }
 0x118   : > { %v879_v13 = vadd.f32 %v878_v11, %v801_v10 }
 0x119   : > { %v1152_v15 = vpop.f32.mrf.mxu1 }
 0x11a   : > { %v883_v16 = vadd.f32 %v882_v12, %v879_v13 }
 0x11c   : > { %vm885_vm2 = vcmp.ge.f32.partialorder %v883_v16, 0.0  ;;  %v887_v17 = vmul.f32 %v886_v14, %v883_v16 }
 0x11e   : > { %v888_v18 = vsel %vm885_vm2, %v883_v16, %v887_v17 }
 0x11f   : > { %889 = vst [vmem:[%s339_s29] sm:$0xff] %v888_v18 }
 0x120 PF: > { %s16_s24 = sadd.s32 1, %s1237_s24   ;;  %s1530_s20 = smov %s1225_s21 }
 0x121   : > { %p13_p10 = scmp.ge.s32.totalorder %s16_s24, 4   ;;  %s1531_s21 = smov %s1310_s27 }
 0x122   : > { %s1532_s22 = smov %s1233_s23  ;;  %s1533_s23 = smov %s1535_s4 }
 0x123   :  { %15 = sbr.rel (!%p13_p10) target bundleno = 5 (0x5), region = 116 }

</bundles_post_ra>
